<compile_context>
chip_gen: v7x
topology: tpu7x:2x2x1
jax: 0.10.0
libtpu: 0.0.40
codegen_flags: <defaults>
</compile_context>

<pallas_src>
import jax
import jax.numpy as jnp
from jax import lax
from jax.experimental import pallas as pl
from jax.experimental.pallas import tpu as pltpu


def _gcn_kernel(a_ref, x_ref, drow_ref, dcol_ref, o_ref, acc_ref):
    """One (tm, tk) step of  out = diag(d) @ A @ diag(d) @ X,  K axis innermost."""
    k = pl.program_id(1)

    @pl.when(k == 0)
    def _init():
        acc_ref[...] = jnp.zeros_like(acc_ref)

    # Fold the column scale into the (tk, Dp) feature tile (f32), then MXU in bf16.
    y = (dcol_ref[...] * x_ref[...]).astype(jnp.bfloat16)          # (tk, Dp)
    acc_ref[...] += jnp.dot(a_ref[...], y,                          # (tm,tk)@(tk,Dp)
                            preferred_element_type=jnp.float32)

    @pl.when(k == pl.num_programs(1) - 1)
    def _finalize():
        # Fold the row scale into the accumulated result; lane-dense f32 store.
        o_ref[...] = (drow_ref[...] * acc_ref[...]).astype(o_ref.dtype)


def _round_up(x, m):
    return (x + m - 1) // m * m


def gcn_propagate(mat, features):
    """(D^{-1/2} A D^{-1/2}) @ features via a tiled Pallas TPU kernel -> (N, D) f32."""
    mat = mat.astype(jnp.float32)
    feats = features.astype(jnp.float32)
    n = mat.shape[0]
    d = feats.shape[1]

    # d_inv_sqrt precomputed once in f32 (needs full rows of A; kernel is K-tiled).
    rowsum = jnp.sum(mat, axis=1, keepdims=True)                    # (n, 1)
    d_inv_sqrt = jnp.where(rowsum > 0.0, lax.rsqrt(rowsum), 0.0)    # inf -> 0 guard

    # MXU-friendly tiles: >=128 rows/cols per issue (256 when the graph allows),
    # lane-dense (multiple-of-128) feature dim.
    tile = 256 if n > 128 else 128
    tm = tk = tile
    n_pad = _round_up(n, tile)
    d_pad = _round_up(d, 128)

    a_bf16 = jnp.pad(mat.astype(jnp.bfloat16), ((0, n_pad - n), (0, n_pad - n)))
    x_pad = jnp.pad(feats, ((0, n_pad - n), (0, d_pad - d)))
    d_vec = jnp.pad(d_inv_sqrt, ((0, n_pad - n), (0, 0)))           # pad rows -> 0

    grid = (n_pad // tm, n_pad // tk)                               # reduction last

    out_pad = pl.pallas_call(
        _gcn_kernel,
        out_shape=jax.ShapeDtypeStruct((n_pad, d_pad), jnp.float32),
        grid=grid,
        in_specs=[
            pl.BlockSpec((tm, tk), lambda i, k: (i, k)),        # A tile (bf16)
            pl.BlockSpec((tk, d_pad), lambda i, k: (k, 0)),     # X tile (f32)
            pl.BlockSpec((tm, 1), lambda i, k: (i, 0)),         # d for this row tile
            pl.BlockSpec((tk, 1), lambda i, k: (k, 0)),         # d for this K tile
        ],
        out_specs=pl.BlockSpec((tm, d_pad), lambda i, k: (i, 0)),
        scratch_shapes=[pltpu.VMEM((tm, d_pad), jnp.float32)],
        compiler_params=pltpu.CompilerParams(
            dimension_semantics=("parallel", "arbitrary")),
    )(a_bf16, x_pad, d_vec, d_vec)

    return out_pad[:n, :d]


def gcn_layer_forward(features, mat, index):
    """Full GCN_layer.forward: normalize + propagate (Pallas kernel), then row scatter."""
    feats = features.astype(jnp.float32)
    out = gcn_propagate(mat, feats)
    # TODO(synk): the row scatter stays as a single fused XLA op — an arbitrary row
    # permutation cannot be expressed at BlockSpec block granularity, and scattering
    # row-by-row from inside the kernel would need ~512 B DMAs (far below the
    # efficient DMA transfer size), so in-kernel fusion would be a perf loss.
    return feats.at[index].set(out)


def _reference(features, mat, index):
    feats = features.astype(jnp.float32)
    mat = mat.astype(jnp.float32)
    rowsum = jnp.sum(mat, axis=1, keepdims=True)
    dv = jnp.where(rowsum > 0.0, rowsum ** -0.5, 0.0)
    out = (dv * mat * dv.reshape(1, -1)) @ feats
    return feats.at[index].set(out)


if __name__ == "__main__":
    key = jax.random.PRNGKey(0)
    k1, k2, k3 = jax.random.split(key, 3)

    N, D = 64, 32  # small graph: 64 nodes, 32-dim features

    features = jax.random.normal(k1, (N, D), dtype=jnp.float32)
    # symmetric 0/1 adjacency with self loops (typical GCN input)
    raw = (jax.random.uniform(k2, (N, N)) > 0.8).astype(jnp.float32)
    mat = jnp.clip(raw + raw.T, 0.0, 1.0) + jnp.eye(N, dtype=jnp.float32)
    # the torch code assigns all N spmm rows through `index` -> a permutation
    index = jax.random.permutation(k3, N)

    out = jax.block_until_ready(gcn_layer_forward(features, mat, index))
    ref = _reference(features, mat, index)

    assert out.shape == (N, D) and out.dtype == jnp.float32
    # bf16 MXU operands (f32 accumulation) -> slightly looser tolerance than pure f32
    assert jnp.allclose(out, ref, atol=2e-2, rtol=2e-2), float(jnp.max(jnp.abs(out - ref)))
    print("KERNEL_OK")
</pallas_src>

<mosaic_0001>
module attributes {stable_mosaic.version = 11 : i64} {
  func.func @_gcn_kernel(%arg0: i32, %arg1: i32, %arg2: memref<128x128xbf16, #tpu.memory_space<vmem>>, %arg3: memref<128x128xf32, #tpu.memory_space<vmem>>, %arg4: memref<128x1xf32, #tpu.memory_space<vmem>>, %arg5: memref<128x1xf32, #tpu.memory_space<vmem>>, %arg6: memref<128x128xf32, #tpu.memory_space<vmem>>, %arg7: memref<128x128xf32, #tpu.memory_space<vmem>>) attributes {dimension_semantics = [#tpu.dimension_semantics<parallel>, #tpu.dimension_semantics<arbitrary>], iteration_bounds = array<i64: 1, 1>, scalar_prefetch = 0 : i64, scratch_operands = 1 : i64, tpu.core_type = #tpu.core_type<tc>, window_params = [{transform_indices = @transform_0, window_bounds = array<i64: 128, 128>}, {transform_indices = @transform_1, window_bounds = array<i64: 128, 128>}, {transform_indices = @transform_2, window_bounds = array<i64: 128, 1>}, {transform_indices = @transform_3, window_bounds = array<i64: 128, 1>}, {transform_indices = @transform_4, window_bounds = array<i64: 128, 128>}]} {
    %c0_i32 = arith.constant 0 : i32
    %0 = arith.cmpi eq, %arg1, %c0_i32 : i32
    %1 = arith.extui %0 : i1 to i32
    %c0_i32_0 = arith.constant 0 : i32
    %2 = arith.cmpi ne, %1, %c0_i32_0 : i32
    scf.if %2 {
      %cst_12 = arith.constant 0.000000e+00 : f32
      %16 = vector.broadcast %cst_12 : f32 to vector<128x128xf32>
      %c0_13 = arith.constant 0 : index
      %c0_14 = arith.constant 0 : index
      %17 = vector.load %arg7[%c0_13, %c0_14] : memref<128x128xf32, #tpu.memory_space<vmem>>, vector<128x128xf32>
      tpu.vector_store %arg7[%c0_13, %c0_14], %16 {strides = array<i32>} : memref<128x128xf32, #tpu.memory_space<vmem>>, vector<128x128xf32>,
    } else {
    }
    %c0 = arith.constant 0 : index
    %c0_1 = arith.constant 0 : index
    %3 = vector.load %arg5[%c0, %c0_1] : memref<128x1xf32, #tpu.memory_space<vmem>>, vector<128x1xf32>
    %c0_2 = arith.constant 0 : index
    %c0_3 = arith.constant 0 : index
    %4 = vector.load %arg3[%c0_2, %c0_3] : memref<128x128xf32, #tpu.memory_space<vmem>>, vector<128x128xf32>
    %5 = vector.broadcast %3 : vector<128x1xf32> to vector<128x128xf32>
    %6 = arith.mulf %5, %4 : vector<128x128xf32>
    %7 = arith.truncf %6 : vector<128x128xf32> to vector<128x128xbf16>
    %c0_4 = arith.constant 0 : index
    %c0_5 = arith.constant 0 : index
    %8 = vector.load %arg7[%c0_4, %c0_5] : memref<128x128xf32, #tpu.memory_space<vmem>>, vector<128x128xf32>
    %c0_6 = arith.constant 0 : index
    %c0_7 = arith.constant 0 : index
    %9 = vector.load %arg2[%c0_6, %c0_7] : memref<128x128xbf16, #tpu.memory_space<vmem>>, vector<128x128xbf16>
    %cst = arith.constant dense<0.000000e+00> : vector<128x128xf32>
    %10 = tpu.matmul %9, %7, %cst {dimension_numbers = #tpu.dot_dimension_numbers<[1], [0], [0], [1], [0, 0, 1, 1], [], []>} : vector<128x128xbf16>, vector<128x128xbf16>, vector<128x128xf32> -> vector<128x128xf32>
    %11 = arith.addf %8, %10 : vector<128x128xf32>
    %c0_8 = arith.constant 0 : index
    %c0_9 = arith.constant 0 : index
    %12 = vector.load %arg7[%c0_8, %c0_9] : memref<128x128xf32, #tpu.memory_space<vmem>>, vector<128x128xf32>
    tpu.vector_store %arg7[%c0_8, %c0_9], %11 {strides = array<i32>} : memref<128x128xf32, #tpu.memory_space<vmem>>, vector<128x128xf32>,
    %c0_i32_10 = arith.constant 0 : i32
    %13 = arith.cmpi eq, %arg1, %c0_i32_10 : i32
    %14 = arith.extui %13 : i1 to i32
    %c0_i32_11 = arith.constant 0 : i32
    %15 = arith.cmpi ne, %14, %c0_i32_11 : i32
    scf.if %15 {
      %c0_12 = arith.constant 0 : index
      %c0_13 = arith.constant 0 : index
      %16 = vector.load %arg4[%c0_12, %c0_13] : memref<128x1xf32, #tpu.memory_space<vmem>>, vector<128x1xf32>
      %c0_14 = arith.constant 0 : index
      %c0_15 = arith.constant 0 : index
      %17 = vector.load %arg7[%c0_14, %c0_15] : memref<128x128xf32, #tpu.memory_space<vmem>>, vector<128x128xf32>
      %18 = vector.broadcast %16 : vector<128x1xf32> to vector<128x128xf32>
      %19 = arith.mulf %18, %17 : vector<128x128xf32>
      %c0_16 = arith.constant 0 : index
      %c0_17 = arith.constant 0 : index
      %20 = vector.load %arg6[%c0_16, %c0_17] : memref<128x128xf32, #tpu.memory_space<vmem>>, vector<128x128xf32>
      tpu.vector_store %arg6[%c0_16, %c0_17], %19 {strides = array<i32>} : memref<128x128xf32, #tpu.memory_space<vmem>>, vector<128x128xf32>,
    } else {
    }
    return
  }
  func.func @transform_0(%arg0: i32, %arg1: i32) -> (i32, i32) {
    %c0_i32 = arith.constant 0 : i32
    return %arg0, %arg1 : i32, i32
  }
  func.func @transform_1(%arg0: i32, %arg1: i32) -> (i32, i32) {
    %c0_i32 = arith.constant 0 : i32
    %c0_i32_0 = arith.constant 0 : i32
    return %arg1, %c0_i32 : i32, i32
  }
  func.func @transform_2(%arg0: i32, %arg1: i32) -> (i32, i32) {
    %c0_i32 = arith.constant 0 : i32
    %c0_i32_0 = arith.constant 0 : i32
    return %arg0, %c0_i32 : i32, i32
  }
  func.func @transform_3(%arg0: i32, %arg1: i32) -> (i32, i32) {
    %c0_i32 = arith.constant 0 : i32
    %c0_i32_0 = arith.constant 0 : i32
    return %arg1, %c0_i32 : i32, i32
  }
  func.func @transform_4(%arg0: i32, %arg1: i32) -> (i32, i32) {
    %c0_i32 = arith.constant 0 : i32
    %c0_i32_0 = arith.constant 0 : i32
    return %arg0, %c0_i32 : i32, i32
  }
}

</mosaic_0001>

<bundles_post_ra>
// kernel: tpu_custom_call.1
= control target key start
LH: loop header
LB: loop body
LE: loop exit
PB: predicated region body
PF: predicated region fallthrough
CT: control target
= control target key end

     0   :  { %v657_v2 = vmov 0   ;;  %s866_s0 = inlined_call_operand.vmem [shape: bf16[128,128], index: 0, kind: input, shape index: {}]   ;;  %s867_s1 = inlined_call_operand.vmem [shape: f32[128,128], index: 1, kind: input, shape index: {}]   ;;  %s868_s2 = inlined_call_operand.vmem [shape: f32[128,1], index: 2, kind: input, shape index: {}]   ;;  %s869_s3 = inlined_call_operand.vmem [shape: f32[128,1], index: 3, kind: input, shape index: {}]   ;;  %s870_s4 = inlined_call_operand.hbm [shape: f32[128,128], index: 4, kind: output, shape index: {}]  }
   0x1   :  { %v41_v0 = vld [vmem:[%s869_s3 + $0x10] sm:$0xff]  ;;  %v39_v1 = vld [vmem:[%s869_s3] sm:$0xff]  ;;  %624 = vset.pattern.permute.xlu1 %v657_v2  ;;  %623 = vset.pattern.permute.xlu0 %v657_v2  ;;  %v42_v3 = vld [vmem:[%s869_s3 + $0x18] sm:$0xff] }
   0x2   :  { %83 = vperm.xlu1 %624, %v41_v0   ;;  %73 = vperm.xlu0 %623, %v39_v1   ;;  %v40_v4 = vld [vmem:[%s869_s3 + $0x8] sm:$0xff]  ;;  %v43_v6 = vld [vmem:[%s869_s3 + $0x20] sm:$0xff]  ;;  %v46_v7 = vld [vmem:[%s869_s3 + $0x38] sm:$0xff] }
   0x3   :  { %v44_v5 = vld [vmem:[%s869_s3 + $0x28] sm:$0xff]  ;;  %v45_v8 = vld [vmem:[%s869_s3 + $0x30] sm:$0xff]  ;;  %v47_v10 = vld [vmem:[%s869_s3 + $0x40] sm:$0xff] }
   0x4   :  { %v48_v9 = vld [vmem:[%s869_s3 + $0x48] sm:$0xff]  ;;  %v50_v11 = vld [vmem:[%s869_s3 + $0x58] sm:$0xff]  ;;  %v49_v12 = vld [vmem:[%s869_s3 + $0x50] sm:$0xff] }
   0x6   :  { %88 = vperm.xlu1 %624, %v42_v3   ;;  %78 = vperm.xlu0 %623, %v40_v4  }
   0xa   :  { %98 = vperm.xlu1 %624, %v44_v5   ;;  %93 = vperm.xlu0 %623, %v43_v6  }
   0xe   :  { %108 = vperm.xlu1 %624, %v46_v7   ;;  %103 = vperm.xlu0 %623, %v45_v8  }
  0x12   :  { %118 = vperm.xlu1 %624, %v48_v9   ;;  %113 = vperm.xlu0 %623, %v47_v10  }
  0x13   :  { %9 = vsyncpa [#allocation4], 0  ;;  %v52_v13 = vld [vmem:[%s869_s3 + $0x68] sm:$0xff]  ;;  %v51_v14 = vld [vmem:[%s869_s3 + $0x60] sm:$0xff] }
  0x14   :  { %v54_v15 = vld [vmem:[%s869_s3 + $0x78] sm:$0xff]  ;;  %v53_v16 = vld [vmem:[%s869_s3 + $0x70] sm:$0xff]  ;;  %v388_v17 = vld [vmem:[%s868_s2 + $0x8] sm:$0xff] }
  0x15   :  { %v387_v18 = vld [vmem:[%s868_s2] sm:$0xff]  ;;  %v390_v19 = vld [vmem:[%s868_s2 + $0x18] sm:$0xff]  ;;  %v389_v20 = vld [vmem:[%s868_s2 + $0x10] sm:$0xff] }
  0x16   :  { %128 = vperm.xlu1 %624, %v50_v11   ;;  %123 = vperm.xlu0 %623, %v49_v12   ;;  %v392_v21 = vld [vmem:[%s868_s2 + $0x28] sm:$0xff]  ;;  %v391_v22 = vld [vmem:[%s868_s2 + $0x20] sm:$0xff]  ;;  %v394_v25 = vld [vmem:[%s868_s2 + $0x38] sm:$0xff] }
  0x17   :  { %v625_v23 = vld [vmem:[%s866_s0] sm:$0xff]   ;;  %v393_v26 = vld [vmem:[%s868_s2 + $0x30] sm:$0xff]  ;;  %v396_v27 = vld [vmem:[%s868_s2 + $0x48] sm:$0xff] }
  0x18   :  { %v626_v24 = vld [vmem:[%s866_s0 + $0x20] sm:$0xff]   ;;  %587 = vmatprep.mubr.bf16.mxu0 %v625_v23  ;;  %v398_v29 = vld [vmem:[%s868_s2 + $0x58] sm:$0xff]  ;;  %v397_v30 = vld [vmem:[%s868_s2 + $0x50] sm:$0xff] }
  0x19   :  { %595 = vmatprep.mubr.bf16.mxu1 %v626_v24  ;;  %v395_v28 = vld [vmem:[%s868_s2 + $0x40] sm:$0xff]  ;;  %v400_v31 = vld [vmem:[%s868_s2 + $0x68] sm:$0xff]  ;;  %v402_v33 = vld [vmem:[%s868_s2 + $0x78] sm:$0xff] }
  0x1a   :  { %138 = vperm.xlu1 %624, %v52_v13   ;;  %133 = vperm.xlu0 %623, %v51_v14   ;;  %v399_v32 = vld [vmem:[%s868_s2 + $0x60] sm:$0xff]  ;;  %v401_v34 = vld [vmem:[%s868_s2 + $0x70] sm:$0xff]  ;;  %v58_v39 = vld [vmem:[%s867_s1 + $0x18] sm:$0xff] }
  0x1b   :  { %v57_v37 = vld [vmem:[%s867_s1 + $0x10] sm:$0xff]  ;;  %v55_v38 = vld [vmem:[%s867_s1] sm:$0xff]  ;;  %v56_v40 = vld [vmem:[%s867_s1 + $0x8] sm:$0xff] }
  0x1c   :  { %v60_v47 = vld [vmem:[%s867_s1 + $0x28] sm:$0xff]  ;;  %v59_v48 = vld [vmem:[%s867_s1 + $0x20] sm:$0xff]  ;;  %v62_v55 = vld [vmem:[%s867_s1 + $0x38] sm:$0xff] }
  0x1d   :  { %v61_v56 = vld [vmem:[%s867_s1 + $0x30] sm:$0xff]  ;;  %v64_v62 = vld [vmem:[%s867_s1 + $0x48] sm:$0xff]  ;;  %v63_v63 = vld [vmem:[%s867_s1 + $0x40] sm:$0xff] }
  0x1e   :  { %148 = vperm.xlu1 %624, %v54_v15   ;;  %143 = vperm.xlu0 %623, %v53_v16   ;;  %v66_v5 = vld [vmem:[%s867_s1 + $0x58] sm:$0xff]  ;;  %v65_v6 = vld [vmem:[%s867_s1 + $0x50] sm:$0xff]  ;;  %v68_v12 = vld [vmem:[%s867_s1 + $0x68] sm:$0xff] }
  0x1f   :  { %v67_v13 = vld [vmem:[%s867_s1 + $0x60] sm:$0xff] }
  0x22   :  { %426 = vperm.xlu1 %624, %v388_v17   ;;  %421 = vperm.xlu0 %623, %v387_v18  }
  0x26   :  { %436 = vperm.xlu1 %624, %v390_v19   ;;  %431 = vperm.xlu0 %623, %v389_v20   ;;  %v70_v19 = vld [vmem:[%s867_s1 + $0x78] sm:$0xff]  ;;  %v69_v20 = vld [vmem:[%s867_s1 + $0x70] sm:$0xff] }
  0x2a   :  { %446 = vperm.xlu1 %624, %v392_v21   ;;  %441 = vperm.xlu0 %623, %v391_v22  }
  0x2e   :  { %456 = vperm.xlu1 %624, %v394_v25   ;;  %451 = vperm.xlu0 %623, %v393_v26  }
  0x32   :  { %466 = vperm.xlu1 %624, %v396_v27   ;;  %461 = vperm.xlu0 %623, %v395_v28   ;;  %v627_v27 = vld [vmem:[%s866_s0 + $0x8] sm:$0xff]  }
  0x33   :  { %v628_v28 = vld [vmem:[%s866_s0 + $0x28] sm:$0xff]  }
  0x36   :  { %476 = vperm.xlu1 %624, %v398_v29   ;;  %471 = vperm.xlu0 %623, %v397_v30   ;;  %v629_v29 = vld [vmem:[%s866_s0 + $0x10] sm:$0xff]  }
  0x37   :  { %v630_v30 = vld [vmem:[%s866_s0 + $0x30] sm:$0xff]  }
  0x3a   :  { %486 = vperm.xlu1 %624, %v400_v31   ;;  %481 = vperm.xlu0 %623, %v399_v32   ;;  %v631_v31 = vld [vmem:[%s866_s0 + $0x18] sm:$0xff]  }
  0x3b   :  { %v632_v32 = vld [vmem:[%s866_s0 + $0x38] sm:$0xff]   ;;  %s658_s0 = smov [#allocation3]  }
  0x3c   :  { %s536_s17 = sshll.u32 %s658_s0, 4  ;;  %s537_s17 = int_to_ptr.vmem [resolvable:$true] %s536_s17 }
  0x3d   :  { %s633_s18 = scalar_lea.vmem %s537_s17, 2048  ;;  %p638_p1 = scmp.lt.s32.totalorder %s537_s17, %s537_s17 }
  0x3e   :  { %496 = vperm.xlu1 %624, %v402_v33   ;;  %491 = vperm.xlu0 %623, %v401_v34   ;;  %p634_p0 = scmp.ne.s32.totalorder %s537_s17, %s633_s18  ;;  %p639_p2 = scmp.lt.s32.totalorder %s633_s18, %s633_s18 }
  0x40   :  { %p640_p3 = por %p639_p2, %p638_p1 }
  0x42   :  { %p641_p4 = pnand %p640_p3, %p634_p0 }
  0x81   :  { %v84_v35 = vpop.permute.xlu1 %83  ;;  %v74_v36 = vpop.permute.xlu0 %73 }
  0x82   :  { %v153_v43 = vmul.f32 %v84_v35, %v57_v37  ;;  %v151_v44 = vmul.f32 %v74_v36, %v55_v38 }
  0x85   :  { %v89_v41 = vpop.permute.xlu1 %88  ;;  %v79_v42 = vpop.permute.xlu0 %78 }
  0x86   :  { %v154_v45 = vmul.f32 %v89_v41, %v58_v39  ;;  %v152_v46 = vmul.f32 %v79_v42, %v56_v40 }
  0x88   :  { %v167_v49 = vpack.c.bf16 %v152_v46, %v151_v44  ;;  %v168_v52 = vpack.c.bf16 %v154_v45, %v153_v43 }
  0x89   :  { %v99_v50 = vpop.permute.xlu1 %98  ;;  %v94_v51 = vpop.permute.xlu0 %93 }
  0x8a   :  { %v156_v53 = vmul.f32 %v99_v50, %v60_v47  ;;  %v155_v54 = vmul.f32 %v94_v51, %v59_v48  ;;  %571 = vmatprep.subr.bf16.mxu0 %v167_v49  ;;  %603 = vmatprep.subr.bf16.mxu1 %v167_v49 }
  0x8b   :  { %572 = vmatpush3.bf16.msra.mxu0 %v167_v49  ;;  %611 = vmatpush3.bf16.msra.mxu1 %v167_v49 }
  0x8c   :  { %573 = vmatprep.subr.bf16.mxu0 %v168_v52  ;;  %604 = vmatprep.subr.bf16.mxu1 %v168_v52  ;;  %v169_v59 = vpack.c.bf16 %v156_v53, %v155_v54 }
  0x8d   :  { %v109_v57 = vpop.permute.xlu1 %108  ;;  %v104_v58 = vpop.permute.xlu0 %103 }
  0x8e   :  { %v158_v60 = vmul.f32 %v109_v57, %v62_v55  ;;  %v157_v61 = vmul.f32 %v104_v58, %v61_v56 }
  0x8f   :  { %574 = vmatpush3.bf16.msra.mxu0 %v168_v52  ;;  %612 = vmatpush3.bf16.msra.mxu1 %v168_v52 }
  0x90   :  { %575 = vmatprep.subr.bf16.mxu0 %v169_v59  ;;  %605 = vmatprep.subr.bf16.mxu1 %v169_v59  ;;  %v170_v2 = vpack.c.bf16 %v158_v60, %v157_v61 }
  0x91   :  { %v119_v0 = vpop.permute.xlu1 %118  ;;  %v114_v1 = vpop.permute.xlu0 %113 }
  0x92   :  { %v160_v3 = vmul.f32 %v119_v0, %v64_v62  ;;  %v159_v4 = vmul.f32 %v114_v1, %v63_v63 }
  0x93   :  { %576 = vmatpush3.bf16.msra.mxu0 %v169_v59  ;;  %613 = vmatpush3.bf16.msra.mxu1 %v169_v59 }
  0x94   :  { %577 = vmatprep.subr.bf16.mxu0 %v170_v2  ;;  %606 = vmatprep.subr.bf16.mxu1 %v170_v2  ;;  %v171_v9 = vpack.c.bf16 %v160_v3, %v159_v4 }
  0x95   :  { %v129_v7 = vpop.permute.xlu1 %128  ;;  %v124_v8 = vpop.permute.xlu0 %123 }
  0x96   :  { %v162_v10 = vmul.f32 %v129_v7, %v66_v5  ;;  %v161_v11 = vmul.f32 %v124_v8, %v65_v6 }
  0x97   :  { %578 = vmatpush3.bf16.msra.mxu0 %v170_v2  ;;  %614 = vmatpush3.bf16.msra.mxu1 %v170_v2 }
  0x98   :  { %579 = vmatprep.subr.bf16.mxu0 %v171_v9  ;;  %607 = vmatprep.subr.bf16.mxu1 %v171_v9  ;;  %v172_v16 = vpack.c.bf16 %v162_v10, %v161_v11 }
  0x99   :  { %v139_v14 = vpop.permute.xlu1 %138  ;;  %v134_v15 = vpop.permute.xlu0 %133 }
  0x9a   :  { %v164_v17 = vmul.f32 %v139_v14, %v68_v12  ;;  %v163_v18 = vmul.f32 %v134_v15, %v67_v13 }
  0x9b   :  { %580 = vmatpush3.bf16.msra.mxu0 %v171_v9  ;;  %615 = vmatpush3.bf16.msra.mxu1 %v171_v9 }
  0x9c   :  { %581 = vmatprep.subr.bf16.mxu0 %v172_v16  ;;  %608 = vmatprep.subr.bf16.mxu1 %v172_v16  ;;  %v173_v23 = vpack.c.bf16 %v164_v17, %v163_v18 }
  0x9d   :  { %v149_v21 = vpop.permute.xlu1 %148  ;;  %v144_v22 = vpop.permute.xlu0 %143 }
  0x9e   :  { %v166_v24 = vmul.f32 %v149_v21, %v70_v19  ;;  %v165_v25 = vmul.f32 %v144_v22, %v69_v20 }
  0x9f   :  { %582 = vmatpush3.bf16.msra.mxu0 %v172_v16  ;;  %616 = vmatpush3.bf16.msra.mxu1 %v172_v16 }
  0xa0   :  { %583 = vmatprep.subr.bf16.mxu0 %v173_v23  ;;  %609 = vmatprep.subr.bf16.mxu1 %v173_v23  ;;  %v174_v26 = vpack.c.bf16 %v166_v24, %v165_v25 }
  0xa1   :  { %v427_v33 = vpop.permute.xlu1 %426  ;;  %v422_v34 = vpop.permute.xlu0 %421 }
  0xa3   :  { %584 = vmatpush3.bf16.msra.mxu0 %v173_v23  ;;  %617 = vmatpush3.bf16.msra.mxu1 %v173_v23 }
  0xa4   :  { %585 = vmatprep.subr.bf16.mxu0 %v174_v26  ;;  %610 = vmatprep.subr.bf16.mxu1 %v174_v26 }
  0xa5   :  { %v437_v35 = vpop.permute.xlu1 %436  ;;  %v432_v36 = vpop.permute.xlu0 %431 }
  0xa7   :  { %586 = vmatpush3.bf16.msra.mxu0 %v174_v26  ;;  %618 = vmatpush3.bf16.msra.mxu1 %v174_v26 }
  0xa9   :  { %v447_v37 = vpop.permute.xlu1 %446  ;;  %v442_v38 = vpop.permute.xlu0 %441 }
  0xaa   :  { %588 = vmatmul.mubr.bf16.vlgmr.msra.gmra.mrb[0].mxu0 %v627_v27  ;;  %596 = vmatmul.mubr.bf16.vlgmr.msra.gmra.mrb[0].mxu1 %v628_v28 }
  0xab   :  { %591 = vmatprep.mubr.bf16.mxu0 %v629_v29  ;;  %599 = vmatprep.mubr.bf16.mxu1 %v630_v30 }
  0xad   :  { %v457_v39 = vpop.permute.xlu1 %456  ;;  %v452_v40 = vpop.permute.xlu0 %451 }
  0xb1   :  { %v467_v41 = vpop.permute.xlu1 %466  ;;  %v462_v42 = vpop.permute.xlu0 %461 }
  0xb2   :  { %592 = vmatmul.mubr.bf16.gmra.mrb[4].mxu0 %v631_v31  ;;  %600 = vmatmul.mubr.bf16.gmra.mrb[4].mxu1 %v632_v32 }
  0xb5   :  { %v477_v43 = vpop.permute.xlu1 %476  ;;  %v472_v44 = vpop.permute.xlu0 %471 }
  0xb9   :  { %v487_v45 = vpop.permute.xlu1 %486  ;;  %v482_v46 = vpop.permute.xlu0 %481 }
  0xbd   :  { %v497_v63 = vpop.permute.xlu1 %496  ;;  %v492_v0 = vpop.permute.xlu0 %491 }
 0x17d   :  { %v589_v47 = vpop.f32.mrb[0].mxu0  ;;  %v597_v48 = vpop.f32.mrb[0].mxu1 }
 0x17e   :  { %v501_v49 = vmul.f32 %v589_v47, %v432_v36  ;;  %v509_v50 = vmul.f32 %v597_v48, %v472_v44  ;;  %v289_v51 = vpop.f32.mrb[1].mxu0  ;;  %v321_v52 = vpop.f32.mrb[1].mxu1 }
 0x17f   :  { %v499_v53 = vmul.f32 %v422_v34, %v289_v51  ;;  %v507_v54 = vmul.f32 %v462_v42, %v321_v52  ;;  %v590_v55 = vpop.f32.mrb[2].mxu0  ;;  %v598_v56 = vpop.f32.mrb[2].mxu1 }
 0x180   :  { %517 = vst [vmem:[#allocation3 + $0x10] sm:$0xff] %v501_v49  ;;  %525 = vst [vmem:[#allocation3 + $0x50] sm:$0xff] %v509_v50  ;;  %v502_v57 = vmul.f32 %v590_v55, %v437_v35  ;;  %v510_v58 = vmul.f32 %v598_v56, %v477_v43  ;;  %v292_v59 = vpop.f32.mrb[3].mxu0  ;;  %v324_v60 = vpop.f32.mrb[3].mxu1 }
 0x181   :  { %515 = vst [vmem:[#allocation3] sm:$0xff] %v499_v53  ;;  %523 = vst [vmem:[#allocation3 + $0x40] sm:$0xff] %v507_v54  ;;  %v500_v61 = vmul.f32 %v427_v33, %v292_v59  ;;  %v508_v62 = vmul.f32 %v467_v41, %v324_v60 }
 0x182   :  { %518 = vst [vmem:[#allocation3 + $0x18] sm:$0xff] %v502_v57  ;;  %526 = vst [vmem:[#allocation3 + $0x58] sm:$0xff] %v510_v58 }
 0x183   :  { %516 = vst [vmem:[#allocation3 + $0x8] sm:$0xff] %v500_v61  ;;  %524 = vst [vmem:[#allocation3 + $0x48] sm:$0xff] %v508_v62 }
 0x185   :  { %v593_v1 = vpop.f32.mrb[4].mxu0  ;;  %v601_v2 = vpop.f32.mrb[4].mxu1 }
 0x186   :  { %v505_v3 = vmul.f32 %v593_v1, %v452_v40  ;;  %v513_v4 = vmul.f32 %v601_v2, %v492_v0  ;;  %v305_v5 = vpop.f32.mrb[5].mxu0  ;;  %v337_v6 = vpop.f32.mrb[5].mxu1 }
 0x187   :  { %v503_v7 = vmul.f32 %v442_v38, %v305_v5  ;;  %v511_v8 = vmul.f32 %v482_v46, %v337_v6  ;;  %v594_v9 = vpop.f32.mrb[6].mxu0  ;;  %v602_v10 = vpop.f32.mrb[6].mxu1 }
 0x188   :  { %521 = vst [vmem:[#allocation3 + $0x30] sm:$0xff] %v505_v3  ;;  %529 = vst [vmem:[#allocation3 + $0x70] sm:$0xff] %v513_v4  ;;  %v506_v11 = vmul.f32 %v594_v9, %v457_v39  ;;  %v514_v12 = vmul.f32 %v602_v10, %v497_v63  ;;  %v308_v13 = vpop.f32.mrb[7].mxu0  ;;  %v340_v14 = vpop.f32.mrb[7].mxu1 }
 0x189   :  { %519 = vst [vmem:[#allocation3 + $0x20] sm:$0xff] %v503_v7  ;;  %527 = vst [vmem:[#allocation3 + $0x60] sm:$0xff] %v511_v8  ;;  %v504_v15 = vmul.f32 %v447_v37, %v308_v13  ;;  %v512_v16 = vmul.f32 %v487_v45, %v340_v14 }
 0x18a   :  { %522 = vst [vmem:[#allocation3 + $0x38] sm:$0xff] %v506_v11  ;;  %530 = vst [vmem:[#allocation3 + $0x78] sm:$0xff] %v514_v12 }
 0x18b   :  { %520 = vst [vmem:[#allocation3 + $0x28] sm:$0xff] %v504_v15  ;;  %528 = vst [vmem:[#allocation3 + $0x68] sm:$0xff] %v512_v16 }
 0x18c   :  { %644 = shalt.err (!%p641_p4)
}
 0x18d   :  { %s645_s21 = scalar_lea.hbm %s870_s4, 2048 }
 0x18e   :  { %p646_p5 = scmp.ne.s32.totalorder %s870_s4, %s645_s21  ;;  %p649_p6 = scmp.lt.u32.totalorder %s645_s21, %s870_s4 }
 0x190   :  { %p651_p7 = pnand %p649_p6, %p646_p5 }
 0x192   :  { %654 = shalt.err (!%p651_p7)
}
 0x193   :  { %s659_s26 = smov 128   ;;  %s660_s27 = smov 8  }
 0x194   :  { %542 = dma.vmem_to_hbm [thread:$0]  %s537_s17, 2048, %s870_s4, [#allocation4], %s659_s26, %s659_s26, %s660_s27  }
 0x195   :  { %655 = dma.done.wait [#allocation4], 2048  }
 0x196   :  { %656 = vsyncadd [#allocation4], 4294965248 }
 0x197   :  { %546 = vsyncpa [#allocation4], 1 }

</bundles_post_ra>
